<compile_context>
chip_gen: v7x
topology: tpu7x:2x2x1
jax: 0.10.0
libtpu: 0.0.40
codegen_flags: <defaults>
</compile_context>

<pallas_src>
import jax
import jax.numpy as jnp
from jax.experimental import pallas as pl
from jax.experimental.pallas import tpu as pltpu

_LANE = 128
_NEG_BIG = -1e30  # bias for padded class columns: exp() underflows to exactly 0


def _round_up(n, m):
    return ((n + m - 1) // m) * m


# ---------------------------------------------------------------------------
# Kernel: fc1+relu, fc2+relu, fc3, log_softmax — all on one batch tile.
# ---------------------------------------------------------------------------
def _mlp_kernel(x_ref, w1_ref, b1_ref, w2_ref, b2_ref, w3_ref, b3_ref, out_ref):
    # Cast to the MXU dtype in VMEM (no extra HBM pass in the wrapper).
    x = x_ref[...].astype(w1_ref.dtype)

    # fc1 + relu: MXU in weight dtype, f32 accumulate; VPU work in f32
    h1 = jnp.dot(x, w1_ref[...], preferred_element_type=jnp.float32) + b1_ref[...]
    h1 = jnp.maximum(h1, 0.0)

    # fc2 + relu
    h2 = jnp.dot(h1.astype(w2_ref.dtype), w2_ref[...],
                 preferred_element_type=jnp.float32) + b2_ref[...]
    h2 = jnp.maximum(h2, 0.0)

    # fc3 (logits; padded class lanes get -1e30 from the bias)
    logits = jnp.dot(h2.astype(w3_ref.dtype), w3_ref[...],
                     preferred_element_type=jnp.float32) + b3_ref[...]

    # log_softmax over the class axis (padded lanes contribute exp(...) == 0)
    m = jnp.max(logits, axis=-1, keepdims=True)
    shifted = logits - m
    lse = jnp.log(jnp.sum(jnp.exp(shifted), axis=-1, keepdims=True))
    out_ref[...] = (shifted - lse).astype(out_ref.dtype)


# ---------------------------------------------------------------------------
# Parameter packing: pad hidden/class dims to 128-lane-clean shapes, opt. bf16.
# ---------------------------------------------------------------------------
def pack_params(params, *, use_bf16=True):
    """params: (in,out) weights and (1,out) biases (already transposed from
    PyTorch's (out,in)).  Returns kernel-ready padded params and out_sz.

    Zero weight-column pads + zero bias pads keep padded hidden lanes at
    exactly 0 through relu; zero weight rows mean padded lanes contribute
    nothing downstream; padded class columns get a -1e30 bias so they vanish
    under log_softmax.  in_sz (784) is NOT padded.  Real outputs are unchanged.
    """
    w1, b1 = params["w1"], params["b1"]
    w2, b2 = params["w2"], params["b2"]
    w3, b3 = params["w3"], params["b3"]
    out_sz = w3.shape[1]

    h1p = _round_up(w1.shape[1], _LANE)
    h2p = _round_up(w2.shape[1], _LANE)
    ocp = _round_up(out_sz, _LANE)

    wdt = jnp.bfloat16 if use_bf16 else jnp.float32

    def pad_w(w, rows, cols):
        return jnp.pad(w, ((0, rows - w.shape[0]), (0, cols - w.shape[1])))

    packed = {
        "w1": pad_w(w1, w1.shape[0], h1p).astype(wdt),
        "w2": pad_w(w2, h1p, h2p).astype(wdt),
        "w3": pad_w(w3, h2p, ocp).astype(wdt),
        "b1": jnp.pad(b1, ((0, 0), (0, h1p - b1.shape[1]))).astype(jnp.float32),
        "b2": jnp.pad(b2, ((0, 0), (0, h2p - b2.shape[1]))).astype(jnp.float32),
        "b3": jnp.pad(b3, ((0, 0), (0, ocp - b3.shape[1])),
                      constant_values=_NEG_BIG).astype(jnp.float32),
    }
    return packed, out_sz


# ---------------------------------------------------------------------------
# Wrapper: ragged batch via cdiv grid (no HBM copy of x), VMEM-budgeted tiles.
# ---------------------------------------------------------------------------
def mlp_forward(x, packed, out_sz, *, batch_tile=2048, out_dtype=jnp.float32,
                vmem_budget_bytes=32 << 20, trim=True):
    """x: (B, in_sz) f32 (or bf16).  packed: output of pack_params."""
    B, in_sz = x.shape
    w1, b1 = packed["w1"], packed["b1"]
    w2, b2 = packed["w2"], packed["b2"]
    w3, b3 = packed["w3"], packed["b3"]
    oc = w3.shape[1]

    x_it = jnp.dtype(x.dtype).itemsize
    w_it = jnp.dtype(w1.dtype).itemsize
    o_it = jnp.dtype(out_dtype).itemsize

    # Conservative VMEM accounting: double-buffered x & out tiles, (possibly
    # double-buffered) resident weights/biases, the in-kernel cast copy of the
    # x tile and a handful of f32 activation temporaries.
    fixed = sum(2 * int(v.size) * jnp.dtype(v.dtype).itemsize for v in packed.values())
    fixed += 2 << 20                                       # compiler scratch headroom
    per_row = 2 * in_sz * x_it + 2 * oc * o_it + 8 * oc * 4
    if x.dtype != w1.dtype:
        per_row += in_sz * w_it                            # in-kernel bf16 copy of x tile
    budget_rows = max(16, ((vmem_budget_bytes - fixed) // per_row // 16) * 16)

    tb = min(int(batch_tile),
             budget_rows,
             max(256, _round_up(pl.cdiv(B, 4), 256)),      # >=4 grid steps on big batches
             _round_up(B, 16))                             # don't exceed (16-rounded) batch
    tb = max(16, _round_up(tb, 16))                        # bf16 sublane pack
    grid = (pl.cdiv(B, tb),)

    vmem_limit = int(min(max(fixed + per_row * tb, 16 << 20), vmem_budget_bytes))

    def resident(shape):
        # Same block every grid step -> weights/biases stay VMEM-resident.
        return pl.BlockSpec(shape, lambda i: (0, 0))

    out = pl.pallas_call(
        _mlp_kernel,
        out_shape=jax.ShapeDtypeStruct((B, oc), out_dtype),
        grid_spec=pl.GridSpec(
            grid=grid,
            in_specs=[
                pl.BlockSpec((tb, in_sz), lambda i: (i, 0)),   # x: stream over batch
                resident(w1.shape), resident(b1.shape),
                resident(w2.shape), resident(b2.shape),
                resident(w3.shape), resident(b3.shape),
            ],
            out_specs=pl.BlockSpec((tb, oc), lambda i: (i, 0)),  # lane-dense (128) store
        ),
        compiler_params=pltpu.CompilerParams(
            dimension_semantics=("parallel",),   # batch axis shards across TCs (v7x)
            vmem_limit_bytes=vmem_limit,
        ),
    )(x, w1, b1, w2, b2, w3, b3)

    # Consumers that can ignore lanes >= out_sz may pass trim=False and skip
    # this extra pass over the output.
    return out[:, :out_sz] if trim else out


# ---------------------------------------------------------------------------
# Init + references.
# ---------------------------------------------------------------------------
def init_params(key, in_sz=784, out_sz=10, layers=(120, 84)):
    """PyTorch-Linear-style init U(-1/sqrt(fan_in), 1/sqrt(fan_in)); weights
    already transposed to (in, out)."""
    dims = [(in_sz, layers[0]), (layers[0], layers[1]), (layers[1], out_sz)]
    params = {}
    for idx, (fan_in, fan_out) in enumerate(dims, start=1):
        key, kw, kb = jax.random.split(key, 3)
        bound = 1.0 / (fan_in ** 0.5)
        params[f"w{idx}"] = jax.random.uniform(
            kw, (fan_in, fan_out), jnp.float32, minval=-bound, maxval=bound)
        params[f"b{idx}"] = jax.random.uniform(
            kb, (1, fan_out), jnp.float32, minval=-bound, maxval=bound)
    return params


def mlp_reference_f32(x, params):
    """Pure-f32 reference (exact PyTorch-module semantics)."""
    h1 = jnp.maximum(x @ params["w1"] + params["b1"], 0.0)
    h2 = jnp.maximum(h1 @ params["w2"] + params["b2"], 0.0)
    logits = h2 @ params["w3"] + params["b3"]
    return jax.nn.log_softmax(logits, axis=1)


def mlp_reference_matched(x, packed, out_sz):
    """Reference with the same dtype/padding policy as the kernel."""
    xc = x.astype(packed["w1"].dtype)
    h1 = jnp.maximum(
        jnp.dot(xc, packed["w1"], preferred_element_type=jnp.float32) + packed["b1"], 0.0)
    h2 = jnp.maximum(
        jnp.dot(h1.astype(packed["w2"].dtype), packed["w2"],
                preferred_element_type=jnp.float32) + packed["b2"], 0.0)
    logits = jnp.dot(h2.astype(packed["w3"].dtype), packed["w3"],
                     preferred_element_type=jnp.float32) + packed["b3"]
    return jax.nn.log_softmax(logits, axis=1)[:, :out_sz]


if __name__ == "__main__":
    key = jax.random.PRNGKey(0)
    kx, kp, kx2, kx3 = jax.random.split(key, 4)

    IN_SZ, OUT_SZ = 784, 10
    raw_params = init_params(kp, in_sz=IN_SZ, out_sz=OUT_SZ, layers=(120, 84))

    # --- test 1: bf16 MXU path (production config), single tile ---------------
    B = 64
    x = jax.random.normal(kx, (B, IN_SZ), jnp.float32)
    packed, out_sz = pack_params(raw_params, use_bf16=True)
    out = jax.block_until_ready(mlp_forward(x, packed, out_sz))
    assert out.shape == (B, OUT_SZ)
    assert jnp.allclose(out, mlp_reference_matched(x, packed, out_sz),
                        atol=1e-4, rtol=1e-4), "mismatch vs matched ref"
    assert jnp.allclose(out, mlp_reference_f32(x, raw_params),
                        atol=1e-1, rtol=1e-1), "bf16 drift too large vs f32 ref"

    # --- test 2: f32 path, ragged batch inside a single tile ------------------
    B2 = 30
    x2 = jax.random.normal(kx2, (B2, IN_SZ), jnp.float32)
    packed32, out_sz32 = pack_params(raw_params, use_bf16=False)
    out2 = jax.block_until_ready(mlp_forward(x2, packed32, out_sz32))
    assert out2.shape == (B2, OUT_SZ)
    assert jnp.allclose(out2, mlp_reference_f32(x2, raw_params),
                        atol=1e-4, rtol=1e-4), "f32 ragged path mismatch vs reference"

    # --- test 3: f32 path, multi-step grid with ragged last block -------------
    B3 = 100
    x3 = jax.random.normal(kx3, (B3, IN_SZ), jnp.float32)
    out3 = jax.block_until_ready(mlp_forward(x3, packed32, out_sz32, batch_tile=32))
    assert out3.shape == (B3, OUT_SZ)
    assert jnp.allclose(out3, mlp_reference_f32(x3, raw_params),
                        atol=1e-4, rtol=1e-4), "multi-step ragged grid mismatch vs reference"

    print("KERNEL_OK")
</pallas_src>

<mosaic_0001>
module attributes {stable_mosaic.version = 11 : i64} {
  func.func @_mlp_kernel(%arg0: i32, %arg1: memref<64x784xf32, #tpu.memory_space<vmem>>, %arg2: memref<784x128xbf16, #tpu.memory_space<vmem>>, %arg3: memref<1x128xf32, #tpu.memory_space<vmem>>, %arg4: memref<128x128xbf16, #tpu.memory_space<vmem>>, %arg5: memref<1x128xf32, #tpu.memory_space<vmem>>, %arg6: memref<128x128xbf16, #tpu.memory_space<vmem>>, %arg7: memref<1x128xf32, #tpu.memory_space<vmem>>, %arg8: memref<64x128xf32, #tpu.memory_space<vmem>>) attributes {dimension_semantics = [#tpu.dimension_semantics<parallel>], iteration_bounds = array<i64: 1>, scalar_prefetch = 0 : i64, scratch_operands = 0 : i64, tpu.core_type = #tpu.core_type<tc>, window_params = [{transform_indices = @transform_0, window_bounds = array<i64: 64, 784>}, {pipeline_mode = #tpu.pipeline_mode<synchronous>, transform_indices = @transform_1, window_bounds = array<i64: 784, 128>}, {pipeline_mode = #tpu.pipeline_mode<synchronous>, transform_indices = @transform_2, window_bounds = array<i64: 1, 128>}, {pipeline_mode = #tpu.pipeline_mode<synchronous>, transform_indices = @transform_3, window_bounds = array<i64: 128, 128>}, {pipeline_mode = #tpu.pipeline_mode<synchronous>, transform_indices = @transform_4, window_bounds = array<i64: 1, 128>}, {pipeline_mode = #tpu.pipeline_mode<synchronous>, transform_indices = @transform_5, window_bounds = array<i64: 128, 128>}, {pipeline_mode = #tpu.pipeline_mode<synchronous>, transform_indices = @transform_6, window_bounds = array<i64: 1, 128>}, {transform_indices = @transform_7, window_bounds = array<i64: 64, 128>}]} {
    %c0 = arith.constant 0 : index
    %c0_0 = arith.constant 0 : index
    %0 = vector.load %arg1[%c0, %c0_0] : memref<64x784xf32, #tpu.memory_space<vmem>>, vector<64x784xf32>
    %1 = arith.truncf %0 : vector<64x784xf32> to vector<64x784xbf16>
    %c0_1 = arith.constant 0 : index
    %c0_2 = arith.constant 0 : index
    %2 = vector.load %arg2[%c0_1, %c0_2] : memref<784x128xbf16, #tpu.memory_space<vmem>>, vector<784x128xbf16>
    %cst = arith.constant dense<0.000000e+00> : vector<64x128xf32>
    %3 = tpu.matmul %1, %2, %cst {dimension_numbers = #tpu.dot_dimension_numbers<[1], [0], [0], [1], [0, 0, 1, 1], [], []>} : vector<64x784xbf16>, vector<784x128xbf16>, vector<64x128xf32> -> vector<64x128xf32>
    %c0_3 = arith.constant 0 : index
    %c0_4 = arith.constant 0 : index
    %4 = vector.load %arg3[%c0_3, %c0_4] : memref<1x128xf32, #tpu.memory_space<vmem>>, vector<1x128xf32>
    %5 = vector.broadcast %4 : vector<1x128xf32> to vector<64x128xf32>
    %6 = arith.addf %3, %5 : vector<64x128xf32>
    %cst_5 = arith.constant 0.000000e+00 : f32
    %7 = vector.broadcast %cst_5 : f32 to vector<64x128xf32>
    %8 = arith.maximumf %6, %7 : vector<64x128xf32>
    %9 = arith.truncf %8 : vector<64x128xf32> to vector<64x128xbf16>
    %c0_6 = arith.constant 0 : index
    %c0_7 = arith.constant 0 : index
    %10 = vector.load %arg4[%c0_6, %c0_7] : memref<128x128xbf16, #tpu.memory_space<vmem>>, vector<128x128xbf16>
    %cst_8 = arith.constant dense<0.000000e+00> : vector<64x128xf32>
    %11 = tpu.matmul %9, %10, %cst_8 {dimension_numbers = #tpu.dot_dimension_numbers<[1], [0], [0], [1], [0, 0, 1, 1], [], []>} : vector<64x128xbf16>, vector<128x128xbf16>, vector<64x128xf32> -> vector<64x128xf32>
    %c0_9 = arith.constant 0 : index
    %c0_10 = arith.constant 0 : index
    %12 = vector.load %arg5[%c0_9, %c0_10] : memref<1x128xf32, #tpu.memory_space<vmem>>, vector<1x128xf32>
    %13 = vector.broadcast %12 : vector<1x128xf32> to vector<64x128xf32>
    %14 = arith.addf %11, %13 : vector<64x128xf32>
    %cst_11 = arith.constant 0.000000e+00 : f32
    %15 = vector.broadcast %cst_11 : f32 to vector<64x128xf32>
    %16 = arith.maximumf %14, %15 : vector<64x128xf32>
    %17 = arith.truncf %16 : vector<64x128xf32> to vector<64x128xbf16>
    %c0_12 = arith.constant 0 : index
    %c0_13 = arith.constant 0 : index
    %18 = vector.load %arg6[%c0_12, %c0_13] : memref<128x128xbf16, #tpu.memory_space<vmem>>, vector<128x128xbf16>
    %cst_14 = arith.constant dense<0.000000e+00> : vector<64x128xf32>
    %19 = tpu.matmul %17, %18, %cst_14 {dimension_numbers = #tpu.dot_dimension_numbers<[1], [0], [0], [1], [0, 0, 1, 1], [], []>} : vector<64x128xbf16>, vector<128x128xbf16>, vector<64x128xf32> -> vector<64x128xf32>
    %c0_15 = arith.constant 0 : index
    %c0_16 = arith.constant 0 : index
    %20 = vector.load %arg7[%c0_15, %c0_16] : memref<1x128xf32, #tpu.memory_space<vmem>>, vector<1x128xf32>
    %21 = vector.broadcast %20 : vector<1x128xf32> to vector<64x128xf32>
    %22 = arith.addf %19, %21 : vector<64x128xf32>
    %cst_17 = arith.constant dense<0xFF800000> : vector<64xf32>
    %23 = vector.multi_reduction <maximumf>, %22, %cst_17 [1] : vector<64x128xf32> to vector<64xf32>
    %24 = vector.shape_cast %23 : vector<64xf32> to vector<64x1xf32>
    %25 = vector.broadcast %24 : vector<64x1xf32> to vector<64x128xf32>
    %26 = arith.subf %22, %25 : vector<64x128xf32>
    %27 = math.exp %26 : vector<64x128xf32>
    %cst_18 = arith.constant dense<0.000000e+00> : vector<64xf32>
    %28 = vector.multi_reduction <add>, %27, %cst_18 [1] : vector<64x128xf32> to vector<64xf32>
    %29 = vector.shape_cast %28 : vector<64xf32> to vector<64x1xf32>
    %30 = math.log %29 : vector<64x1xf32>
    %31 = vector.broadcast %30 : vector<64x1xf32> to vector<64x128xf32>
    %32 = arith.subf %26, %31 : vector<64x128xf32>
    %c0_19 = arith.constant 0 : index
    %c0_20 = arith.constant 0 : index
    %33 = vector.load %arg8[%c0_19, %c0_20] : memref<64x128xf32, #tpu.memory_space<vmem>>, vector<64x128xf32>
    tpu.vector_store %arg8[%c0_19, %c0_20], %32 {strides = array<i32>} : memref<64x128xf32, #tpu.memory_space<vmem>>, vector<64x128xf32>,
    return
  }
  func.func @transform_0(%arg0: i32) -> (i32, i32) {
    %c0_i32 = arith.constant 0 : i32
    %c0_i32_0 = arith.constant 0 : i32
    return %arg0, %c0_i32 : i32, i32
  }
  func.func @transform_1(%arg0: i32) -> (i32, i32) {
    %c0_i32 = arith.constant 0 : i32
    %c0_i32_0 = arith.constant 0 : i32
    %c0_i32_1 = arith.constant 0 : i32
    return %c0_i32, %c0_i32_0 : i32, i32
  }
  func.func @transform_2(%arg0: i32) -> (i32, i32) {
    %c0_i32 = arith.constant 0 : i32
    %c0_i32_0 = arith.constant 0 : i32
    %c0_i32_1 = arith.constant 0 : i32
    return %c0_i32, %c0_i32_0 : i32, i32
  }
  func.func @transform_3(%arg0: i32) -> (i32, i32) {
    %c0_i32 = arith.constant 0 : i32
    %c0_i32_0 = arith.constant 0 : i32
    %c0_i32_1 = arith.constant 0 : i32
    return %c0_i32, %c0_i32_0 : i32, i32
  }
  func.func @transform_4(%arg0: i32) -> (i32, i32) {
    %c0_i32 = arith.constant 0 : i32
    %c0_i32_0 = arith.constant 0 : i32
    %c0_i32_1 = arith.constant 0 : i32
    return %c0_i32, %c0_i32_0 : i32, i32
  }
  func.func @transform_5(%arg0: i32) -> (i32, i32) {
    %c0_i32 = arith.constant 0 : i32
    %c0_i32_0 = arith.constant 0 : i32
    %c0_i32_1 = arith.constant 0 : i32
    return %c0_i32, %c0_i32_0 : i32, i32
  }
  func.func @transform_6(%arg0: i32) -> (i32, i32) {
    %c0_i32 = arith.constant 0 : i32
    %c0_i32_0 = arith.constant 0 : i32
    %c0_i32_1 = arith.constant 0 : i32
    return %c0_i32, %c0_i32_0 : i32, i32
  }
  func.func @transform_7(%arg0: i32) -> (i32, i32) {
    %c0_i32 = arith.constant 0 : i32
    %c0_i32_0 = arith.constant 0 : i32
    return %arg0, %c0_i32 : i32, i32
  }
}

</mosaic_0001>

<bundles_post_ra>
// kernel: tpu_custom_call.1
= control target key start
LH: loop header
LB: loop body
LE: loop exit
PB: predicated region body
PF: predicated region fallthrough
CT: control target
= control target key end

     0   :  { %12 = vsyncpa [#allocation3], 0  ;;  %s1911_s0 = inlined_call_operand.hbm [shape: f32[64,784], index: 0, kind: input, shape index: {}]   ;;  %s1912_s1 = inlined_call_operand.hbm [shape: bf16[784,128], index: 1, kind: input, shape index: {}]   ;;  %s1913_s2 = inlined_call_operand.vmem [shape: f32[1,128], index: 2, kind: input, shape index: {}]   ;;  %s1914_s3 = inlined_call_operand.hbm [shape: bf16[128,128], index: 3, kind: input, shape index: {}]   ;;  %s1915_s4 = inlined_call_operand.vmem [shape: f32[1,128], index: 4, kind: input, shape index: {}]   ;;  %s1916_s5 = inlined_call_operand.hbm [shape: bf16[128,128], index: 5, kind: input, shape index: {}]   ;;  %s1917_s6 = inlined_call_operand.vmem [shape: f32[1,128], index: 6, kind: input, shape index: {}]   ;;  %s1918_s7 = inlined_call_operand.hbm [shape: f32[64,128], index: 7, kind: output, shape index: {}]  }
   0x1   :  { %13 = vsyncpa [#allocation6], 0 }
   0x2   :  { %14 = vsyncpa [#allocation9], 0 }
   0x3   :  { %15 = vsyncpa [#allocation4], 0  ;;  %s1747_s24 = smov [#allocation5]   ;;  %s1629_s28 = scalar_lea.hbm %s1912_s1, 6272 }
   0x4   :  { %s33_s25 = sshll.u32 %s1747_s24, 4  ;;  %p1630_p0 = scmp.ne.s32.totalorder %s1912_s1, %s1629_s28  ;;  %s34_s25 = int_to_ptr.vmem [resolvable:$true] %s33_s25 }
   0x5   :  { %p1633_p1 = scmp.lt.u32.totalorder %s1629_s28, %s1912_s1 }
   0x7   :  { %p1635_p2 = pnand %p1633_p1, %p1630_p0 }
   0x9   :  { %1638 = shalt.err (!%p1635_p2)
}
   0xa   :  { %s1639_s10 = scalar_lea.vmem %s34_s25, 6272  ;;  %p1644_p4 = scmp.lt.s32.totalorder %s34_s25, %s34_s25 }
   0xb   :  { %p1640_p3 = scmp.ne.s32.totalorder %s34_s25, %s1639_s10  ;;  %p1645_p5 = scmp.lt.s32.totalorder %s1639_s10, %s1639_s10 }
   0xd   :  { %p1646_p6 = por %p1645_p5, %p1644_p4 }
   0xf   :  { %p1647_p7 = pnand %p1646_p6, %p1640_p3 }
  0x11   :  { %1650 = shalt.err (!%p1647_p7)
}
  0x12   :  { %s1748_s11 = smov 64   ;;  %s1749_s12 = smov 4  }
  0x13   :  { %39 = dma.hbm_to_vmem [thread:$0]  %s1912_s1, 6272, %s34_s25, [#allocation6], %s1748_s11, %s1748_s11, %s1749_s12  }
  0x14   :  { %s1750_s15 = smov [#allocation2]   ;;  %s1651_s19 = scalar_lea.hbm %s1911_s0, 7168 }
  0x15   :  { %s21_s16 = sshll.u32 %s1750_s15, 4  ;;  %p1652_p8 = scmp.ne.s32.totalorder %s1911_s0, %s1651_s19  ;;  %s22_s16 = int_to_ptr.vmem [resolvable:$true] %s21_s16 }
  0x16   :  { %p1655_p9 = scmp.lt.u32.totalorder %s1651_s19, %s1911_s0 }
  0x18   :  { %p1657_p10 = pnand %p1655_p9, %p1652_p8 }
  0x1a   :  { %1660 = shalt.err (!%p1657_p10)
}
  0x1b   :  { %s1661_s24 = scalar_lea.vmem %s22_s16, 7168  ;;  %p1666_p12 = scmp.lt.s32.totalorder %s22_s16, %s22_s16 }
  0x1c   :  { %p1662_p11 = scmp.ne.s32.totalorder %s22_s16, %s1661_s24  ;;  %p1667_p13 = scmp.lt.s32.totalorder %s1661_s24, %s1661_s24 }
  0x1e   :  { %p1668_p0 = por %p1667_p13, %p1666_p12 }
  0x20   :  { %p1669_p1 = pnand %p1668_p0, %p1662_p11 }
  0x22   :  { %1672 = shalt.err (!%p1669_p1)
}
  0x23   :  { %s1751_s1 = smov 896   ;;  %s1752_s25 = smov 56  }
  0x24   :  { %27 = dma.hbm_to_vmem [thread:$0]  %s1911_s0, 7168, %s22_s16, [#allocation3], %s1751_s1, %s1751_s1, %s1752_s25  }
  0x25   :  { %s1753_s28 = smov [#allocation7]   ;;  %s1754_s30 = smov [#allocation8]  }
  0x26   :  { %s47_s29 = sshll.u32 %s1753_s28, 4  ;;  %s61_s8 = sshll.u32 %s1754_s30, 4  ;;  %s48_s29 = int_to_ptr.vmem [resolvable:$true] %s47_s29  ;;  %s1825_s8 = int_to_ptr.vmem [resolvable:$true] %s61_s8 }
  0x27   :  { %s1673_s13 = scalar_lea.hbm %s1914_s3, 1024 }
  0x28   :  { %p1674_p2 = scmp.ne.s32.totalorder %s1914_s3, %s1673_s13  ;;  %p1677_p3 = scmp.lt.u32.totalorder %s1673_s13, %s1914_s3 }
  0x2a   :  { %p1679_p4 = pnand %p1677_p3, %p1674_p2 }
  0x2c   :  { %1682 = shalt.err (!%p1679_p4)
}
  0x2d   :  { %s1683_s0 = scalar_lea.vmem %s48_s29, 1024  ;;  %p1688_p6 = scmp.lt.s32.totalorder %s48_s29, %s48_s29 }
  0x2e   :  { %p1684_p5 = scmp.ne.s32.totalorder %s48_s29, %s1683_s0  ;;  %p1689_p7 = scmp.lt.s32.totalorder %s1683_s0, %s1683_s0 }
  0x30   :  { %p1690_p8 = por %p1689_p7, %p1688_p6 }
  0x32   :  { %p1691_p9 = pnand %p1690_p8, %p1684_p5 }
  0x34   :  { %1694 = shalt.err (!%p1691_p9)
}
  0x35   :  { %53 = dma.hbm_to_vmem [thread:$0]  %s1914_s3, 1024, %s48_s29, [#allocation6], %s1748_s11, %s1748_s11, %s1749_s12  }
  0x36   :  { %s1695_s22 = scalar_lea.hbm %s1916_s5, 1024 }
  0x37   :  { %p1696_p10 = scmp.ne.s32.totalorder %s1916_s5, %s1695_s22  ;;  %p1699_p11 = scmp.lt.u32.totalorder %s1695_s22, %s1916_s5 }
  0x39   :  { %p1701_p12 = pnand %p1699_p11, %p1696_p10 }
  0x3b   :  { %1704 = shalt.err (!%p1701_p12)
}
  0x3c   :  { %s1705_s26 = scalar_lea.vmem %s1825_s8, 1024  ;;  %p1710_p0 = scmp.lt.s32.totalorder %s1825_s8, %s1825_s8 }
  0x3d   :  { %p1706_p13 = scmp.ne.s32.totalorder %s1825_s8, %s1705_s26  ;;  %p1711_p1 = scmp.lt.s32.totalorder %s1705_s26, %s1705_s26 }
  0x3f   :  { %p1712_p2 = por %p1711_p1, %p1710_p0 }
  0x41   :  { %p1713_p3 = pnand %p1712_p2, %p1706_p13 }
  0x43   :  { %1716 = shalt.err (!%p1713_p3)
}
  0x44   :  { %67 = dma.hbm_to_vmem [thread:$0]  %s1916_s5, 1024, %s1825_s8, [#allocation9], %s1748_s11, %s1748_s11, %s1749_s12  }
  0x45   :  { %1739 = dma.done.wait [#allocation3], 7168  }
  0x46   :  { %1740 = vsyncadd [#allocation3], 4294960128 }
  0x47   :  { %1741 = dma.done.wait [#allocation6], 7296  }
  0x48   :  { %1742 = vsyncadd [#allocation6], 4294960000 }
  0x49   :  { %1743 = dma.done.wait [#allocation9], 1024  }
  0x4a   :  { %1744 = vsyncadd [#allocation9], 4294966272  ;;  %v1532_v0 = vld [vmem:[#allocation5 + $0x40] sm:$0xff]   ;;  %v1536_v4 = vld [vmem:[#allocation5 + $0x48] sm:$0xff]   ;;  %vm566_vm0 = vcmask 130048  }
  0x4b   :  { %v1533_v1 = vld [vmem:[#allocation5] sm:$0xff]   ;;  %1314 = vmatprep.subr.bf16.mxu0 %v1532_v0  ;;  %v1537_v5 = vld [vmem:[#allocation5 + $0x8] sm:$0xff]   ;;  %v1540_v8 = vld [vmem:[#allocation5 + $0x50] sm:$0xff]  }
  0x4c   :  { %v1534_v2 = vld [vmem:[#allocation5 + $0xc0] sm:$0xff]   ;;  %1315 = vmatpush3.bf16.msra.mxu0 %v1533_v1  ;;  %v1538_v6 = vld [vmem:[#allocation5 + $0xc8] sm:$0xff]   ;;  %v1541_v9 = vld [vmem:[#allocation5 + $0x10] sm:$0xff]  }
  0x4d   :  { %v1535_v3 = vld [vmem:[#allocation5 + $0x80] sm:$0xff]   ;;  %1354 = vmatprep.subr.bf16.mxu1 %v1534_v2  ;;  %1316 = vmatprep.subr.bf16.mxu0 %v1536_v4  ;;  %v1539_v7 = vld [vmem:[#allocation5 + $0x88] sm:$0xff]   ;;  %v1542_v10 = vld [vmem:[#allocation5 + $0xd0] sm:$0xff]  }
  0x4e   :  { %1355 = vmatpush3.bf16.msra.mxu1 %v1535_v3  ;;  %v1543_v11 = vld [vmem:[#allocation5 + $0x90] sm:$0xff]   ;;  %v1544_v12 = vld [vmem:[#allocation5 + $0x58] sm:$0xff]   ;;  %v1548_v16 = vld [vmem:[#allocation5 + $0x60] sm:$0xff]  }
  0x4f   :  { %1356 = vmatprep.subr.bf16.mxu1 %v1538_v6  ;;  %v1545_v13 = vld [vmem:[#allocation5 + $0x18] sm:$0xff]   ;;  %v1549_v17 = vld [vmem:[#allocation5 + $0x20] sm:$0xff]   ;;  %v1552_v20 = vld [vmem:[#allocation5 + $0x68] sm:$0xff]  }
  0x50   :  { %1317 = vmatpush3.bf16.msra.mxu0 %v1537_v5  ;;  %v1546_v14 = vld [vmem:[#allocation5 + $0xd8] sm:$0xff]   ;;  %v1550_v18 = vld [vmem:[#allocation5 + $0xe0] sm:$0xff]   ;;  %v1553_v21 = vld [vmem:[#allocation5 + $0x28] sm:$0xff]  }
  0x51   :  { %1318 = vmatprep.subr.bf16.mxu0 %v1540_v8  ;;  %v1547_v15 = vld [vmem:[#allocation5 + $0x98] sm:$0xff]   ;;  %v1551_v19 = vld [vmem:[#allocation5 + $0xa0] sm:$0xff]   ;;  %v1554_v22 = vld [vmem:[#allocation5 + $0xe8] sm:$0xff]  }
  0x52   :  { %1357 = vmatpush3.bf16.msra.mxu1 %v1539_v7  ;;  %v1555_v23 = vld [vmem:[#allocation5 + $0xa8] sm:$0xff]   ;;  %v1556_v24 = vld [vmem:[#allocation5 + $0x70] sm:$0xff]   ;;  %v1560_v28 = vld [vmem:[#allocation5 + $0x78] sm:$0xff]  }
  0x53   :  { %1358 = vmatprep.subr.bf16.mxu1 %v1542_v10  ;;  %v1557_v25 = vld [vmem:[#allocation5 + $0x30] sm:$0xff]   ;;  %v1561_v29 = vld [vmem:[#allocation5 + $0x38] sm:$0xff]   ;;  %v84_v31 = vld [vmem:[#allocation2 + $0x8] sm:$0xff] }
  0x54   :  { %1319 = vmatpush3.bf16.msra.mxu0 %v1541_v9  ;;  %v1558_v26 = vld [vmem:[#allocation5 + $0xf0] sm:$0xff]   ;;  %v1562_v30 = vld [vmem:[#allocation5 + $0xf8] sm:$0xff]   ;;  %v91_v32 = vld [vmem:[#allocation2 + $0x40] sm:$0xff] }
  0x55   :  { %1320 = vmatprep.subr.bf16.mxu0 %v1544_v12  ;;  %v1559_v27 = vld [vmem:[#allocation5 + $0xb0] sm:$0xff]   ;;  %v140_v33 = vpack.c.bf16 %v91_v32, %v84_v31  ;;  %v1563_v34 = vld [vmem:[#allocation5 + $0xb8] sm:$0xff]   ;;  %v83_v35 = vld [vmem:[#allocation2] sm:$0xff] }
  0x56   :  { %1359 = vmatpush3.bf16.msra.mxu1 %v1543_v11  ;;  %v90_v36 = vld [vmem:[#allocation2 + $0x38] sm:$0xff]  ;;  %v1564_v38 = vld [vmem:[#allocation5 + $0x140] sm:$0xff]   ;;  %v93_v40 = vld [vmem:[#allocation2 + $0x50] sm:$0xff] }
  0x57   :  { %1360 = vmatprep.subr.bf16.mxu1 %v1546_v14  ;;  %611 = vmatprep.mubr.bf16.mxu0 %v140_v33  ;;  %v139_v37 = vpack.c.bf16 %v90_v36, %v83_v35  ;;  %v86_v39 = vld [vmem:[#allocation2 + $0x18] sm:$0xff]  ;;  %v1565_v42 = vld [vmem:[#allocation5 + $0x100] sm:$0xff]   ;;  %v85_v43 = vld [vmem:[#allocation2 + $0x10] sm:$0xff] }
  0x58   :  { %1321 = vmatpush3.bf16.msra.mxu0 %v1545_v13  ;;  %v142_v41 = vpack.c.bf16 %v93_v40, %v86_v39  ;;  %v92_v44 = vld [vmem:[#allocation2 + $0x48] sm:$0xff]  ;;  %v98_v48 = vld [vmem:[#allocation2 + $0x78] sm:$0xff]  ;;  %v105_v49 = vld [vmem:[#allocation2 + $0xb0] sm:$0xff] }
  0x59   :  { %1322 = vmatprep.subr.bf16.mxu0 %v1548_v16  ;;  %v141_v45 = vpack.c.bf16 %v92_v44, %v85_v43  ;;  %v1566_v46 = vld [vmem:[#allocation5 + $0x148] sm:$0xff]   ;;  %v97_v50 = vld [vmem:[#allocation2 + $0x70] sm:$0xff]  ;;  %v147_v52 = vpack.c.bf16 %v105_v49, %v98_v48  ;;  %v107_v56 = vld [vmem:[#allocation2 + $0xc0] sm:$0xff] }
  0x5a   :  { %1361 = vmatpush3.bf16.msra.mxu1 %v1547_v15  ;;  %676 = vmatprep.mubr.bf16.mxu1 %v142_v41  ;;  %v1567_v47 = vld [vmem:[#allocation5 + $0x108] sm:$0xff]   ;;  %v1568_v54 = vld [vmem:[#allocation5 + $0x150] sm:$0xff]   ;;  %v99_v59 = vld [vmem:[#allocation2 + $0x80] sm:$0xff] }
  0x5b   :  { %1362 = vmatprep.subr.bf16.mxu1 %v1550_v18  ;;  %v104_v51 = vld [vmem:[#allocation2 + $0xa8] sm:$0xff]  ;;  %v1569_v58 = vld [vmem:[#allocation5 + $0x110] sm:$0xff]   ;;  %v106_v60 = vld [vmem:[#allocation2 + $0xb8] sm:$0xff] }
  0x5c   :  { %1323 = vmatpush3.bf16.msra.mxu0 %v1549_v17  ;;  %v146_v53 = vpack.c.bf16 %v104_v51, %v97_v50  ;;  %v100_v55 = vld [vmem:[#allocation2 + $0x88] sm:$0xff]  ;;  %v148_v61 = vpack.c.bf16 %v106_v60, %v99_v59  ;;  %v1570_v62 = vld [vmem:[#allocation5 + $0x158] sm:$0xff]   ;;  %v119_v1 = vld [vmem:[#allocation2 + $0x120] sm:$0xff] }
  0x5d   :  { %1324 = vmatprep.subr.bf16.mxu0 %v1552_v20  ;;  %v149_v57 = vpack.c.bf16 %v107_v56, %v100_v55  ;;  %v1571_v63 = vld [vmem:[#allocation5 + $0x118] sm:$0xff]   ;;  %v112_v0 = vld [vmem:[#allocation2 + $0xe8] sm:$0xff]  ;;  %v111_v3 = vld [vmem:[#allocation2 + $0xe0] sm:$0xff] }
  0x5e   :  { %1363 = vmatpush3.bf16.msra.mxu1 %v1551_v19  ;;  %v154_v2 = vpack.c.bf16 %v119_v1, %v112_v0  ;;  %v118_v4 = vld [vmem:[#allocation2 + $0x118] sm:$0xff]  ;;  %v1572_v5 = vld [vmem:[#allocation5 + $0x160] sm:$0xff]   ;;  %v121_v8 = vld [vmem:[#allocation2 + $0x130] sm:$0xff] }
  0x5f   :  { %1364 = vmatprep.subr.bf16.mxu1 %v1554_v22  ;;  %v114_v6 = vld [vmem:[#allocation2 + $0xf8] sm:$0xff]  ;;  %v153_v7 = vpack.c.bf16 %v118_v4, %v111_v3  ;;  %v1573_v10 = vld [vmem:[#allocation5 + $0x120] sm:$0xff]   ;;  %v113_v11 = vld [vmem:[#allocation2 + $0xf0] sm:$0xff] }
  0x60   :  { %1325 = vmatpush3.bf16.msra.mxu0 %v1553_v21  ;;  %v156_v9 = vpack.c.bf16 %v121_v8, %v114_v6  ;;  %v120_v12 = vld [vmem:[#allocation2 + $0x128] sm:$0xff]  ;;  %v1574_v13 = vld [vmem:[#allocation5 + $0x180] sm:$0xff]   ;;  %v126_v17 = vld [vmem:[#allocation2 + $0x158] sm:$0xff] }
  0x61   :  { %1326 = vmatprep.subr.bf16.mxu0 %v1556_v24  ;;  %v155_v14 = vpack.c.bf16 %v120_v12, %v113_v11  ;;  %v1575_v15 = vld [vmem:[#allocation5 + $0x168] sm:$0xff]   ;;  %v133_v18 = vld [vmem:[#allocation2 + $0x190] sm:$0xff]  ;;  %v135_v24 = vld [vmem:[#allocation2 + $0x1a0] sm:$0xff] }
  0x62   :  { %1365 = vmatpush3.bf16.msra.mxu1 %v1555_v23  ;;  %v1576_v16 = vld [vmem:[#allocation5 + $0x128] sm:$0xff]   ;;  %v125_v19 = vld [vmem:[#allocation2 + $0x150] sm:$0xff]  ;;  %v161_v20 = vpack.c.bf16 %v133_v18, %v126_v17  ;;  %v1580_v33 = vld [vmem:[#allocation5 + $0x138] sm:$0xff]  }
  0x63   :  { %1366 = vmatprep.subr.bf16.mxu1 %v1558_v26  ;;  %v132_v21 = vld [vmem:[#allocation2 + $0x188] sm:$0xff]  ;;  %v1577_v22 = vld [vmem:[#allocation5 + $0x170] sm:$0xff]   ;;  %v87_v35 = vld [vmem:[#allocation2 + $0x20] sm:$0xff] }
  0x64   :  { %1327 = vmatpush3.bf16.msra.mxu0 %v1557_v25  ;;  %v128_v23 = vld [vmem:[#allocation2 + $0x168] sm:$0xff]  ;;  %v160_v25 = vpack.c.bf16 %v132_v21, %v125_v19  ;;  %v102_v41 = vld [vmem:[#allocation2 + $0x98] sm:$0xff]  ;;  %v103_v44 = vld [vmem:[#allocation2 + $0xa0] sm:$0xff] }
  0x65   :  { %1328 = vmatprep.subr.bf16.mxu0 %v1560_v28  ;;  %v163_v26 = vpack.c.bf16 %v135_v24, %v128_v23  ;;  %v127_v28 = vld [vmem:[#allocation2 + $0x160] sm:$0xff]  ;;  %v88_v32 = vld [vmem:[#allocation2 + $0x28] sm:$0xff]  ;;  %v101_v50 = vld [vmem:[#allocation2 + $0x90] sm:$0xff] }
  0x66   :  { %1367 = vmatpush3.bf16.msra.mxu1 %v1559_v27  ;;  %v1578_v27 = vld [vmem:[#allocation5 + $0x130] sm:$0xff]   ;;  %v96_v39 = vld [vmem:[#allocation2 + $0x68] sm:$0xff]  ;;  %v131_v55 = vld [vmem:[#allocation2 + $0x180] sm:$0xff] }
  0x67   :  { %1368 = vmatprep.subr.bf16.mxu1 %v1562_v30  ;;  %v1579_v30 = vld [vmem:[#allocation5 + $0x178] sm:$0xff]   ;;  %v124_v48 = vld [vmem:[#allocation2 + $0x148] sm:$0xff]  ;;  %v115_v59 = vld [vmem:[#allocation2 + $0x100] sm:$0xff] }
  0x68   :  { %1329 = vmatpush3.bf16.msra.mxu0 %v1561_v29  ;;  %v134_v29 = vld [vmem:[#allocation2 + $0x198] sm:$0xff]  ;;  %v108_v51 = vld [vmem:[#allocation2 + $0xc8] sm:$0xff]  ;;  %v1582_v6 = vld [vmem:[#allocation7 + $0x8] sm:$0xff]  }
  0x69   :  { %1394 = vmatprep.subr.bf16.mxu0 %v1564_v38  ;;  %v162_v31 = vpack.c.bf16 %v134_v29, %v127_v28  ;;  %v89_v38 = vld [vmem:[#allocation2 + $0x30] sm:$0xff]  ;;  %v138_v56 = vld [vmem:[#allocation2 + $0x1b8] sm:$0xff]  ;;  %v136_v3 = vld [vmem:[#allocation2 + $0x1a8] sm:$0xff] }
  0x6a   :  { %1369 = vmatpush3.bf16.msra.mxu1 %v1563_v34  ;;  %v95_v34 = vld [vmem:[#allocation2 + $0x60] sm:$0xff]  ;;  %v145_v40 = vpack.c.bf16 %v96_v39, %v89_v38  ;;  %v122_v60 = vld [vmem:[#allocation2 + $0x138] sm:$0xff]  ;;  %v1593_v17 = vld [vmem:[#allocation8 + $0x20] sm:$0xff]  }
  0x6b   :  { %612 = vmatmul.mubr.bf16.vlgmr.msra.gmra.mrb[0].mxu0 %v139_v37  ;;  %1463 = vmatprep.subr.bf16.mxu1 %v1574_v13  ;;  %v144_v36 = vpack.c.bf16 %v95_v34, %v88_v32  ;;  %v94_v37 = vld [vmem:[#allocation2 + $0x58] sm:$0xff]  ;;  %v157_v0 = vpack.c.bf16 %v122_v60, %v115_v59  ;;  %v1584_v8 = vld [vmem:[#allocation7 + $0x18] sm:$0xff]   ;;  %v1594_v18 = vld [vmem:[#allocation8 + $0x28] sm:$0xff]  }
  0x6c   :  { %1395 = vmatpush3.bf16.msra.mxu0 %v1565_v42  ;;  %619 = vmatprep.mubr.bf16.mxu0 %v147_v52  ;;  %v109_v42 = vld [vmem:[#allocation2 + $0xd0] sm:$0xff]  ;;  %v143_v43 = vpack.c.bf16 %v94_v37, %v87_v35  ;;  %v116_v52 = vld [vmem:[#allocation2 + $0x108] sm:$0xff]  ;;  %v1587_v11 = vld [vmem:[#allocation7 + $0x30] sm:$0xff]  }
  0x6d   :  { %677 = vmatmul.mubr.bf16.vlgmr.msra.gmra.mrb[0].mxu1 %v141_v45  ;;  %1396 = vmatprep.subr.bf16.mxu0 %v1566_v46  ;;  %v110_v45 = vld [vmem:[#allocation2 + $0xd8] sm:$0xff]  ;;  %v151_v46 = vpack.c.bf16 %v109_v42, %v102_v41  ;;  %v1588_v12 = vld [vmem:[#allocation7 + $0x38] sm:$0xff]  }
  0x6e   :  { %684 = vmatprep.mubr.bf16.mxu1 %v149_v57  ;;  %1464 = vmatpush3.bf16.msra.mxu1 %v1574_v13  ;;  %v152_v49 = vpack.c.bf16 %v110_v45, %v103_v44  ;;  %v150_v57 = vpack.c.bf16 %v108_v51, %v101_v50  ;;  %v1589_v13 = vld [vmem:[#allocation8] sm:$0xff]  }
  0x6f   :  { %1497 = vmatprep.subr.bf16.mxu1 %v1589_v13 }
  0x70   :  { %1397 = vmatpush3.bf16.msra.mxu0 %v1567_v47  ;;  %v117_v47 = vld [vmem:[#allocation2 + $0x110] sm:$0xff] }
  0x71   :  { %1398 = vmatprep.subr.bf16.mxu0 %v1568_v54  ;;  %v159_v54 = vpack.c.bf16 %v124_v48, %v117_v47 }
  0x73   :  { %620 = vmatmul.mubr.bf16.gmra.mrb[4].mxu0 %v146_v53  ;;  %v123_v53 = vld [vmem:[#allocation2 + $0x140] sm:$0xff] }
  0x74   :  { %1399 = vmatpush3.bf16.msra.mxu0 %v1569_v58  ;;  %627 = vmatprep.mubr.bf16.mxu0 %v154_v2  ;;  %v158_v58 = vpack.c.bf16 %v123_v53, %v116_v52  ;;  %v129_v2 = vld [vmem:[#allocation2 + $0x170] sm:$0xff] }
  0x75   :  { %1400 = vmatprep.subr.bf16.mxu0 %v1570_v62  ;;  %685 = vmatmul.mubr.bf16.gmra.mrb[4].mxu1 %v148_v61  ;;  %v166_v61 = vpack.c.bf16 %v138_v56, %v131_v55  ;;  %v130_v62 = vld [vmem:[#allocation2 + $0x178] sm:$0xff]  ;;  %v164_v4 = vpack.c.bf16 %v136_v3, %v129_v2 }
  0x76   :  { %692 = vmatprep.mubr.bf16.mxu1 %v156_v9  ;;  %v1585_v9 = vld [vmem:[#allocation7 + $0x20] sm:$0xff]  }
  0x78   :  { %1401 = vmatpush3.bf16.msra.mxu0 %v1571_v63  ;;  %v137_v63 = vld [vmem:[#allocation2 + $0x1b0] sm:$0xff] }
  0x79   :  { %1402 = vmatprep.subr.bf16.mxu0 %v1572_v5  ;;  %v165_v1 = vpack.c.bf16 %v137_v63, %v130_v62  ;;  %v1581_v5 = vld [vmem:[#allocation7] sm:$0xff]  }
  0x7b   :  { %628 = vmatmul.mubr.bf16.gmra.mrb[8].mxu0 %v153_v7  ;;  %v1583_v7 = vld [vmem:[#allocation7 + $0x10] sm:$0xff]  }
  0x7c   :  { %1403 = vmatpush3.bf16.msra.mxu0 %v1573_v10  ;;  %635 = vmatprep.mubr.bf16.mxu0 %v161_v20  ;;  %v1586_v10 = vld [vmem:[#allocation7 + $0x28] sm:$0xff]   ;;  %v1242_v20 = vld [vmem:[%s1913_s2] ss:$0 sm:$0xff] }
  0x7d   :  { %1404 = vmatprep.subr.bf16.mxu0 %v1575_v15  ;;  %693 = vmatmul.mubr.bf16.gmra.mrb[8].mxu1 %v155_v14  ;;  %v1590_v14 = vld [vmem:[#allocation8 + $0x8] sm:$0xff]   ;;  %v1591_v15 = vld [vmem:[#allocation8 + $0x10] sm:$0xff]  }
  0x7e   :  { %700 = vmatprep.mubr.bf16.mxu1 %v163_v26 }
  0x80   :  { %1405 = vmatpush3.bf16.msra.mxu0 %v1576_v16  ;;  %v1592_v16 = vld [vmem:[#allocation8 + $0x18] sm:$0xff]  }
  0x81   :  { %1406 = vmatprep.subr.bf16.mxu0 %v1577_v22 }
  0x83   :  { %636 = vmatmul.mubr.bf16.gmra.mrb[12].mxu0 %v160_v25 }
  0x84   :  { %1407 = vmatpush3.bf16.msra.mxu0 %v1578_v27  ;;  %741 = vmatprep.mubr.bf16.mxu0 %v144_v36 }
  0x85   :  { %1408 = vmatprep.subr.bf16.mxu0 %v1579_v30  ;;  %701 = vmatmul.mubr.bf16.gmra.mrb[12].mxu1 %v162_v31 }
  0x86   :  { %1465 = vmatprep.mubr.msk.bf16.mxu1 %vm566_vm0, %v145_v40 }
  0x88   :  { %1409 = vmatpush3.bf16.msra.mxu0 %v1580_v33 }
  0x89   :  { %1473 = vmatprep.subr.bf16.mxu0 %v1581_v5 }
  0x8b   :  { %742 = vmatmul.mubr.bf16.vlgmr.msra.gmra.mrb[16].mxu0 %v143_v43 }
  0x8c   :  { %749 = vmatprep.mubr.bf16.mxu0 %v151_v46  ;;  %1474 = vmatpush3.bf16.msra.mxu0 %v1581_v5 }
  0x8d   :  { %1466 = vmatmul.mubr.msk.bf16.vlgmr.msra.gmra.mrb[16].mxu1 %vm566_vm0, %v152_v49  ;;  %1475 = vmatprep.subr.bf16.mxu0 %v1582_v6 }
  0x8e   :  { %1469 = vmatprep.mubr.msk.bf16.mxu1 %vm566_vm0, %v159_v54  ;;  %1498 = vmatpush3.bf16.msra.mxu1 %v1589_v13 }
  0x8f   :  { %1499 = vmatprep.subr.bf16.mxu1 %v1590_v14 }
  0x90   :  { %1476 = vmatpush3.bf16.msra.mxu0 %v1582_v6 }
  0x91   :  { %1477 = vmatprep.subr.bf16.mxu0 %v1583_v7 }
  0x92   :  { %1500 = vmatpush3.bf16.msra.mxu1 %v1590_v14 }
  0x93   :  { %750 = vmatmul.mubr.bf16.gmra.mrb[20].mxu0 %v150_v57  ;;  %1501 = vmatprep.subr.bf16.mxu1 %v1591_v15 }
  0x94   :  { %757 = vmatprep.mubr.bf16.mxu0 %v158_v58  ;;  %1478 = vmatpush3.bf16.msra.mxu0 %v1583_v7 }
  0x95   :  { %1470 = vmatmul.mubr.msk.bf16.gmra.mrb[20].mxu1 %vm566_vm0, %v166_v61  ;;  %1479 = vmatprep.subr.bf16.mxu0 %v1584_v8 }
  0x96   :  { %1502 = vmatpush3.bf16.msra.mxu1 %v1591_v15 }
  0x97   :  { %1503 = vmatprep.subr.bf16.mxu1 %v1592_v16 }
  0x98   :  { %1480 = vmatpush3.bf16.msra.mxu0 %v1584_v8 }
  0x99   :  { %1481 = vmatprep.subr.bf16.mxu0 %v1585_v9 }
  0x9a   :  { %1504 = vmatpush3.bf16.msra.mxu1 %v1592_v16 }
  0x9b   :  { %758 = vmatmul.mubr.bf16.gmra.mrb[24].mxu0 %v157_v0  ;;  %1505 = vmatprep.subr.bf16.mxu1 %v1593_v17 }
  0x9c   :  { %765 = vmatprep.mubr.bf16.mxu0 %v165_v1  ;;  %1482 = vmatpush3.bf16.msra.mxu0 %v1585_v9 }
  0x9d   :  { %1483 = vmatprep.subr.bf16.mxu0 %v1586_v10 }
  0x9e   :  { %1506 = vmatpush3.bf16.msra.mxu1 %v1593_v17 }
  0x9f   :  { %1507 = vmatprep.subr.bf16.mxu1 %v1594_v18 }
  0xa0   :  { %1484 = vmatpush3.bf16.msra.mxu0 %v1586_v10 }
  0xa1   :  { %1485 = vmatprep.subr.bf16.mxu0 %v1587_v11 }
  0xa2   :  { %1508 = vmatpush3.bf16.msra.mxu1 %v1594_v18 }
  0xa3   :  { %766 = vmatmul.mubr.bf16.gmra.mrb[28].mxu0 %v164_v4 }
  0xa4   :  { %1486 = vmatpush3.bf16.msra.mxu0 %v1587_v11 }
  0xa5   :  { %1487 = vmatprep.subr.bf16.mxu0 %v1588_v12 }
  0xa8   :  { %1488 = vmatpush3.bf16.msra.mxu0 %v1588_v12 }
 0x13e   :  { %v1330_v19 = vpop.f32.mrb[0].mxu0 }
 0x13f   :  { %v1331_v21 = vpop.f32.mrb[1].mxu0 }
 0x140   :  { %v1332_v22 = vadd.f32 %v1331_v21, %v1330_v19  ;;  %v1333_v23 = vpop.f32.mrb[2].mxu0  ;;  %v1370_v24 = vpop.f32.mrb[0].mxu1 }
 0x141   :  { %v1334_v25 = vpop.f32.mrb[3].mxu0  ;;  %v1371_v28 = vpop.f32.mrb[1].mxu1 }
 0x142   :  { %v614_v26 = vadd.f32 %v1332_v22, %v1242_v20  ;;  %v1335_v27 = vadd.f32 %v1334_v25, %v1333_v23  ;;  %v1372_v29 = vadd.f32 %v1371_v28, %v1370_v24  ;;  %v1373_v30 = vpop.f32.mrb[2].mxu1 }
 0x143   :  { %v1374_v32 = vpop.f32.mrb[3].mxu1 }
 0x144   :  { %v617_v31 = vadd.f32 %v1335_v27, %v1242_v20  ;;  %v679_v33 = vadd.f32 %v1372_v29, %v614_v26  ;;  %v1375_v34 = vadd.f32 %v1374_v32, %v1373_v30 }
 0x146   :  { %v1336_v35 = vpop.f32.mrb[4].mxu0  ;;  %v682_v36 = vadd.f32 %v1375_v34, %v617_v31 }
 0x147   :  { %v1337_v37 = vpop.f32.mrb[5].mxu0 }
 0x148   :  { %v1338_v38 = vadd.f32 %v1337_v37, %v1336_v35  ;;  %v1339_v39 = vpop.f32.mrb[6].mxu0  ;;  %v1376_v40 = vpop.f32.mrb[4].mxu1 }
 0x149   :  { %v1340_v41 = vpop.f32.mrb[7].mxu0  ;;  %v1377_v44 = vpop.f32.mrb[5].mxu1 }
 0x14a   :  { %v622_v42 = vadd.f32 %v1338_v38, %v1242_v20  ;;  %v1341_v43 = vadd.f32 %v1340_v41, %v1339_v39  ;;  %v1378_v45 = vadd.f32 %v1377_v44, %v1376_v40  ;;  %v1379_v46 = vpop.f32.mrb[6].mxu1 }
 0x14b   :  { %v1380_v48 = vpop.f32.mrb[7].mxu1 }
 0x14c   :  { %v625_v47 = vadd.f32 %v1341_v43, %v1242_v20  ;;  %v687_v49 = vadd.f32 %v1378_v45, %v622_v42  ;;  %v1381_v50 = vadd.f32 %v1380_v48, %v1379_v46 }
 0x14e   :  { %v1342_v51 = vpop.f32.mrb[8].mxu0  ;;  %v690_v52 = vadd.f32 %v1381_v50, %v625_v47 }
 0x14f   :  { %v1343_v53 = vpop.f32.mrb[9].mxu0 }
 0x150   :  { %v1344_v54 = vadd.f32 %v1343_v53, %v1342_v51  ;;  %v1345_v55 = vpop.f32.mrb[10].mxu0  ;;  %v1382_v56 = vpop.f32.mrb[8].mxu1 }
 0x151   :  { %v1346_v57 = vpop.f32.mrb[11].mxu0  ;;  %v1383_v60 = vpop.f32.mrb[9].mxu1 }
 0x152   :  { %v630_v58 = vadd.f32 %v1344_v54, %v1242_v20  ;;  %v1347_v59 = vadd.f32 %v1346_v57, %v1345_v55  ;;  %v1384_v61 = vadd.f32 %v1383_v60, %v1382_v56  ;;  %v1385_v62 = vpop.f32.mrb[10].mxu1 }
 0x153   :  { %v1386_v0 = vpop.f32.mrb[11].mxu1 }
 0x154   :  { %v633_v63 = vadd.f32 %v1347_v59, %v1242_v20  ;;  %v695_v1 = vadd.f32 %v1384_v61, %v630_v58  ;;  %v1387_v2 = vadd.f32 %v1386_v0, %v1385_v62 }
 0x156   :  { %v1348_v3 = vpop.f32.mrb[12].mxu0  ;;  %v698_v4 = vadd.f32 %v1387_v2, %v633_v63 }
 0x157   :  { %v1349_v5 = vpop.f32.mrb[13].mxu0 }
 0x158   :  { %v1350_v6 = vadd.f32 %v1349_v5, %v1348_v3  ;;  %v1351_v7 = vpop.f32.mrb[14].mxu0  ;;  %v1388_v8 = vpop.f32.mrb[12].mxu1 }
 0x159   :  { %v1352_v9 = vpop.f32.mrb[15].mxu0  ;;  %v1389_v12 = vpop.f32.mrb[13].mxu1 }
 0x15a   :  { %v638_v10 = vadd.f32 %v1350_v6, %v1242_v20  ;;  %v1353_v11 = vadd.f32 %v1352_v9, %v1351_v7  ;;  %v1390_v13 = vadd.f32 %v1389_v12, %v1388_v8  ;;  %v1391_v14 = vpop.f32.mrb[14].mxu1 }
 0x15b   :  { %v1392_v16 = vpop.f32.mrb[15].mxu1 }
 0x15c   :  { %v641_v15 = vadd.f32 %v1353_v11, %v1242_v20  ;;  %v703_v17 = vadd.f32 %v1390_v13, %v638_v10  ;;  %v1393_v18 = vadd.f32 %v1392_v16, %v1391_v14 }
 0x15e   :  { %v1410_v19 = vpop.f32.mrb[16].mxu0  ;;  %v706_v21 = vadd.f32 %v1393_v18, %v641_v15  ;;  %v1596_v18 = vld [vmem:[#allocation8 + $0x38] sm:$0xff]  }
 0x15f   :  { %v1411_v22 = vpop.f32.mrb[17].mxu0 }
 0x160   :  { %v1412_v23 = vadd.f32 %v1411_v22, %v1410_v19  ;;  %v1413_v24 = vpop.f32.mrb[18].mxu0  ;;  %v1467_v26 = vpop.f32.mrb[16].mxu1  ;;  %v1296_v19 = vld [vmem:[%s1915_s4] ss:$0 sm:$0xff] }
 0x161   :  { %v1414_v25 = vpop.f32.mrb[19].mxu0  ;;  %v808_v29 = vpop.f32.mrb[17].mxu1 }
 0x162   :  { %v1415_v27 = vadd.f32 %v1414_v25, %v1413_v24  ;;  %v744_v28 = vadd.f32 %v1412_v23, %v679_v33  ;;  %v1468_v30 = vpop.f32.mrb[18].mxu1 }
 0x163   :  { %v811_v34 = vpop.f32.mrb[19].mxu1 }
 0x164   :  { %v809_v31 = vadd.f32 %v808_v29, %v744_v28  ;;  %v747_v32 = vadd.f32 %v1415_v27, %v682_v36 }
 0x166   :  { %v812_v35 = vadd.f32 %v811_v34, %v747_v32  ;;  %v1416_v37 = vpop.f32.mrb[20].mxu0  ;;  %v839_v38 = vmax.f32 %v809_v31, 0.0 }
 0x167   :  { %v1417_v20 = vpop.f32.mrb[21].mxu0 }
 0x168   :  { %v840_v39 = vmax.f32 %v812_v35, 0.0  ;;  %v1418_v40 = vadd.f32 %v1417_v20, %v1416_v37  ;;  %v1419_v41 = vpop.f32.mrb[22].mxu0  ;;  %v1471_v43 = vpop.f32.mrb[20].mxu1 }
 0x169   :  { %v1420_v42 = vpop.f32.mrb[23].mxu0  ;;  %v824_v47 = vpop.f32.mrb[21].mxu1 }
 0x16a   :  { %v847_v44 = vpack.c.bf16 %v840_v39, %v839_v38  ;;  %v752_v45 = vadd.f32 %v1418_v40, %v687_v49  ;;  %v1421_v46 = vadd.f32 %v1420_v42, %v1419_v41  ;;  %v1472_v48 = vpop.f32.mrb[22].mxu1 }
 0x16b   :  { %v827_v51 = vpop.f32.mrb[23].mxu1 }
 0x16c   :  { %v817_v33 = vadd.f32 %v1467_v26, %v752_v45  ;;  %v755_v50 = vadd.f32 %v1421_v46, %v690_v52  ;;  %1489 = vmatprep.mubr.bf16.mxu0 %v847_v44 }
 0x16e   :  { %v820_v36 = vadd.f32 %v1468_v30, %v755_v50  ;;  %v1422_v53 = vpop.f32.mrb[24].mxu0  ;;  %v841_v55 = vmax.f32 %v817_v33, 0.0  ;;  %v1305_v33 = vld [vmem:[%s1917_s6] ss:$0 sm:$0xff]  ;;  %s1755_s6 = smov [#allocation10]  }
 0x16f   :  { %v1423_v54 = vpop.f32.mrb[25].mxu0  ;;  %s1228_s29 = sshll.u32 %s1755_s6, 4  ;;  %s1229_s29 = int_to_ptr.vmem [resolvable:$true] %s1228_s29 }
 0x170   :  { %v842_v56 = vmax.f32 %v820_v36, 0.0  ;;  %v1424_v57 = vadd.f32 %v1423_v54, %v1422_v53  ;;  %v1425_v58 = vpop.f32.mrb[26].mxu0  ;;  %s1717_s30 = scalar_lea.vmem %s1229_s29, 1024  ;;  %p1722_p5 = scmp.lt.s32.totalorder %s1229_s29, %s1229_s29 }
 0x171   :  { %v1426_v59 = vpop.f32.mrb[27].mxu0  ;;  %p1718_p4 = scmp.ne.s32.totalorder %s1229_s29, %s1717_s30  ;;  %p1723_p6 = scmp.lt.s32.totalorder %s1717_s30, %s1717_s30 }
 0x172   :  { %v848_v60 = vpack.c.bf16 %v842_v56, %v841_v55  ;;  %v1427_v61 = vadd.f32 %v1426_v59, %v1425_v58  ;;  %v760_v62 = vadd.f32 %v1424_v57, %v695_v1 }
 0x173   :  { %p1724_p7 = por %p1723_p6, %p1722_p5 }
 0x174   :  { %v825_v63 = vadd.f32 %v824_v47, %v760_v62  ;;  %1490 = vmatmul.mubr.bf16.vlgmr.msra.gmra.mrb[32].mxu0 %v848_v60  ;;  %v763_v49 = vadd.f32 %v1427_v61, %v698_v4  ;;  %v1595_v4 = vld [vmem:[#allocation8 + $0x30] sm:$0xff]  }
 0x175   :  { %1509 = vmatprep.subr.bf16.mxu1 %v1595_v4  ;;  %p1725_p8 = pnand %p1724_p7, %p1718_p4 }
 0x176   :  { %v828_v0 = vadd.f32 %v827_v51, %v763_v49  ;;  %v1428_v2 = vpop.f32.mrb[28].mxu0  ;;  %v843_v52 = vmax.f32 %v825_v63, 0.0  ;;  %1510 = vmatpush3.bf16.msra.mxu1 %v1595_v4 }
 0x177   :  { %v1429_v3 = vpop.f32.mrb[29].mxu0  ;;  %1511 = vmatprep.subr.bf16.mxu1 %v1596_v18 }
 0x178   :  { %v844_v5 = vmax.f32 %v828_v0, 0.0  ;;  %v1430_v6 = vadd.f32 %v1429_v3, %v1428_v2  ;;  %v1431_v7 = vpop.f32.mrb[30].mxu0 }
 0x179   :  { %v1432_v8 = vpop.f32.mrb[31].mxu0 }
 0x17a   :  { %v849_v9 = vpack.c.bf16 %v844_v5, %v843_v52  ;;  %v768_v10 = vadd.f32 %v1430_v6, %v703_v17  ;;  %v1433_v11 = vadd.f32 %v1432_v8, %v1431_v7  ;;  %1512 = vmatpush3.bf16.msra.mxu1 %v1596_v18 }
 0x17c   :  { %v833_v12 = vadd.f32 %v1471_v43, %v768_v10  ;;  %v771_v13 = vadd.f32 %v1433_v11, %v706_v21  ;;  %1493 = vmatprep.mubr.bf16.mxu0 %v849_v9 }
 0x17e   :  { %v836_v14 = vadd.f32 %v1472_v48, %v771_v13  ;;  %v845_v15 = vmax.f32 %v833_v12, 0.0 }
 0x180   :  { %v846_v1 = vmax.f32 %v836_v14, 0.0 }
 0x182   :  { %v850_v16 = vpack.c.bf16 %v846_v1, %v845_v15 }
 0x184   :  { %1494 = vmatmul.mubr.bf16.gmra.mrb[36].mxu0 %v850_v16 }
 0x247   :  { %v1491_v17 = vpop.f32.mrb[32].mxu0 }
 0x248   :  { %v965_v22 = vadd.f32 %v1491_v17, %v1296_v19  ;;  %v956_v23 = vpop.f32.mrb[33].mxu0 }
 0x249   :  { %v957_v21 = vadd.f32 %v1296_v19, %v956_v23  ;;  %v1492_v24 = vpop.f32.mrb[34].mxu0 }
 0x24a   :  { %v968_v25 = vadd.f32 %v1492_v24, %v1296_v19  ;;  %v959_v26 = vpop.f32.mrb[35].mxu0  ;;  %v989_v28 = vmax.f32 %v965_v22, 0.0 }
 0x24b   :  { %v960_v27 = vadd.f32 %v1296_v19, %v959_v26  ;;  %v987_v30 = vmax.f32 %v957_v21, 0.0 }
 0x24c   :  { %v990_v29 = vmax.f32 %v968_v25, 0.0 }
 0x24d   :  { %v988_v31 = vmax.f32 %v960_v27, 0.0 }
 0x24e   :  { %v996_v32 = vpack.c.bf16 %v990_v29, %v989_v28 }
 0x24f   :  { %v995_v34 = vpack.c.bf16 %v988_v31, %v987_v30 }
 0x251   :  { %1513 = vmatprep.mubr.bf16.mxu1 %v995_v34 }
 0x252   :  { %1514 = vmatmul.mubr.bf16.vlgmr.msra.gmra.mrb[24].mxu1 %v996_v32 }
 0x257   :  { %v1495_v35 = vpop.f32.mrb[36].mxu0 }
 0x258   :  { %v981_v37 = vadd.f32 %v1495_v35, %v1296_v19  ;;  %v972_v20 = vpop.f32.mrb[37].mxu0 }
 0x259   :  { %v973_v38 = vadd.f32 %v1296_v19, %v972_v20  ;;  %v1496_v39 = vpop.f32.mrb[38].mxu0 }
 0x25a   :  { %v984_v40 = vadd.f32 %v1496_v39, %v1296_v19  ;;  %v975_v41 = vpop.f32.mrb[39].mxu0  ;;  %v993_v43 = vmax.f32 %v981_v37, 0.0 }
 0x25b   :  { %v976_v42 = vadd.f32 %v1296_v19, %v975_v41  ;;  %v991_v45 = vmax.f32 %v973_v38, 0.0 }
 0x25c   :  { %v994_v44 = vmax.f32 %v984_v40, 0.0 }
 0x25d   :  { %v992_v46 = vmax.f32 %v976_v42, 0.0 }
 0x25e   :  { %v998_v47 = vpack.c.bf16 %v994_v44, %v993_v43 }
 0x25f   :  { %v997_v48 = vpack.c.bf16 %v992_v46, %v991_v45 }
 0x261   :  { %1517 = vmatprep.mubr.bf16.mxu1 %v997_v48 }
 0x262   :  { %1518 = vmatmul.mubr.bf16.gmra.mrb[28].mxu1 %v998_v47 }
 0x325   :  { %v1515_v50 = vpop.f32.mrb[24].mxu1 }
 0x326   :  { %v1113_v51 = vadd.f32 %v1515_v50, %v1305_v33  ;;  %v1104_v36 = vpop.f32.mrb[25].mxu1 }
 0x327   :  { %v1105_v53 = vadd.f32 %v1305_v33, %v1104_v36  ;;  %v1516_v54 = vpop.f32.mrb[26].mxu1 }
 0x328   :  { %1139 = vmax.xlane.f32.xlu1 %v1113_v51  ;;  %v1107_v55 = vpop.f32.mrb[27].mxu1  ;;  %v1116_v56 = vadd.f32 %v1516_v54, %v1305_v33 }
 0x329   :  { %1135 = vmax.xlane.f32.xlu0 %v1105_v53  ;;  %v1108_v57 = vadd.f32 %v1305_v33, %v1107_v55 }
 0x32c   :  { %1141 = vmax.xlane.f32.xlu1 %v1116_v56 }
 0x32d   :  { %1137 = vmax.xlane.f32.xlu0 %v1108_v57 }
 0x335   :  { %v1519_v58 = vpop.f32.mrb[28].mxu1 }
 0x336   :  { %v1120_v59 = vpop.f32.mrb[29].mxu1  ;;  %v1129_v49 = vadd.f32 %v1519_v58, %v1305_v33 }
 0x337   :  { %v1121_v60 = vadd.f32 %v1305_v33, %v1120_v59  ;;  %v1520_v61 = vpop.f32.mrb[30].mxu1 }
 0x338   :  { %v1123_v62 = vpop.f32.mrb[31].mxu1  ;;  %v1132_v0 = vadd.f32 %v1520_v61, %v1305_v33 }
 0x339   :  { %v1124_v63 = vadd.f32 %v1305_v33, %v1123_v62  ;;  %1143 = vmax.xlane.f32.xlu0 %v1121_v60 }
 0x33b   :  { %1145 = vmax.xlane.f32.xlu1 %v1124_v63 }
 0x33d   :  { %1147 = vmax.xlane.f32.xlu0 %v1129_v49 }
 0x33f   :  { %1149 = vmax.xlane.f32.xlu1 %v1132_v0 }
 0x3b5   :  { %v1140_v2 = vpop.xlane.xlu1 %1139 }
 0x3b6   :  { %v1153_v3 = vsub.f32 %v1113_v51, %v1140_v2  ;;  %v1136_v52 = vpop.xlane.xlu0 %1135 }
 0x3b7   :  { %v1875_v5 = vsub.f32 %v1105_v53, %v1136_v52 }
 0x3b8   :  { %v1163_v6 = vmul.f32 1.442695, %v1153_v3 }
 0x3b9   :  { %v1159_v7 = vmul.f32 1.442695, %v1875_v5  ;;  %v1142_v8 = vpop.xlane.xlu1 %1141 }
 0x3ba   :  { %1597 = vpow2.f32 %v1163_v6  ;;  %v1154_v9 = vsub.f32 %v1116_v56, %v1142_v8  ;;  %v1138_v10 = vpop.xlane.xlu0 %1137 }
 0x3bb   :  { %v1878_v11 = vsub.f32 %v1108_v57, %v1138_v10  ;;  %1599 = vpow2.f32 %v1159_v7 }
 0x3bc   :  { %v1165_v12 = vmul.f32 1.442695, %v1154_v9 }
 0x3bd   :  { %v1161_v13 = vmul.f32 1.442695, %v1878_v11 }
 0x3be   :  { %1601 = vpow2.f32 %v1165_v12 }
 0x3bf   :  { %1603 = vpow2.f32 %v1161_v13 }
 0x3c4   :  { %v1598_v14 = vpop.eup %1597 }
 0x3c5   :  { %1179 = vadd.xlane.f32.xlu0 %v1598_v14  ;;  %v1600_v1 = vpop.eup %1599 }
 0x3c6   :  { %v1144_v15 = vpop.xlane.xlu0 %1143 }
 0x3c7   :  { %v1881_v16 = vsub.f32 %v1121_v60, %v1144_v15 }
 0x3c8   :  { %v1602_v4 = vpop.eup %1601  ;;  %v1146_v18 = vpop.xlane.xlu1 %1145 }
 0x3c9   :  { %v1167_v19 = vmul.f32 1.442695, %v1881_v16  ;;  %v1884_v17 = vsub.f32 %v1124_v63, %v1146_v18  ;;  %1181 = vadd.xlane.f32.xlu1 %v1602_v4  ;;  %1175 = vadd.xlane.f32.xlu0 %v1600_v1  ;;  %v1604_v24 = vpop.eup %1603 }
 0x3ca   :  { %v1148_v22 = vpop.xlane.xlu0 %1147 }
 0x3cb   :  { %1605 = vpow2.f32 %v1167_v19  ;;  %v1169_v23 = vmul.f32 1.442695, %v1884_v17  ;;  %v1887_v21 = vsub.f32 %v1129_v49, %v1148_v22 }
 0x3cc   :  { %v1150_v25 = vpop.xlane.xlu1 %1149 }
 0x3cd   :  { %1607 = vpow2.f32 %v1169_v23  ;;  %v1171_v26 = vmul.f32 1.442695, %v1887_v21  ;;  %v1890_v27 = vsub.f32 %v1132_v0, %v1150_v25  ;;  %1177 = vadd.xlane.f32.xlu1 %v1604_v24 }
 0x3cf   :  { %1609 = vpow2.f32 %v1171_v26  ;;  %v1173_v28 = vmul.f32 1.442695, %v1890_v27 }
 0x3d1   :  { %1611 = vpow2.f32 %v1173_v28 }
 0x3d5   :  { %v1606_v29 = vpop.eup %1605 }
 0x3d6   :  { %1183 = vadd.xlane.f32.xlu0 %v1606_v29 }
 0x3d7   :  { %v1608_v30 = vpop.eup %1607 }
 0x3d8   :  { %1185 = vadd.xlane.f32.xlu1 %v1608_v30 }
 0x3d9   :  { %v1610_v31 = vpop.eup %1609 }
 0x3da   :  { %1187 = vadd.xlane.f32.xlu0 %v1610_v31 }
 0x3db   :  { %v1612_v32 = vpop.eup %1611 }
 0x3dc   :  { %1189 = vadd.xlane.f32.xlu1 %v1612_v32 }
 0x452   :  { %v1180_v34 = vpop.xlane.xlu0 %1179 }
 0x453   :  { %1613 = vlog2.f32 %v1180_v34 }
 0x456   :  { %v1182_v35 = vpop.xlane.xlu1 %1181  ;;  %v1176_v37 = vpop.xlane.xlu0 %1175 }
 0x457   :  { %1615 = vlog2.f32 %v1182_v35 }
 0x458   :  { %1617 = vlog2.f32 %v1176_v37 }
 0x45a   :  { %v1178_v20 = vpop.xlane.xlu1 %1177 }
 0x45b   :  { %1619 = vlog2.f32 %v1178_v20 }
 0x45d   :  { %v1614_v38 = vpop.eup %1613 }
 0x45e   :  { %v1196_v39 = vmul.f32 0.6931472, %v1614_v38 }
 0x460   :  { %v1209_v40 = vsub.f32 %v1153_v3, %v1196_v39 }
 0x461   :  { %v1616_v41 = vpop.eup %1615 }
 0x462   :  { %v1618_v42 = vpop.eup %1617  ;;  %1217 = vst [vmem:[#allocation10 + $0x10] sm:$0xff] %v1209_v40  ;;  %v1198_v43 = vmul.f32 0.6931472, %v1616_v41 }
 0x463   :  { %v1192_v44 = vmul.f32 0.6931472, %v1618_v42  ;;  %v1184_v45 = vpop.xlane.xlu0 %1183 }
 0x464   :  { %v1210_v46 = vsub.f32 %v1154_v9, %v1198_v43  ;;  %1621 = vlog2.f32 %v1184_v45 }
 0x465   :  { %v1620_v47 = vpop.eup %1619  ;;  %v1207_v48 = vsub.f32 %v1875_v5, %v1192_v44  ;;  %v1186_v33 = vpop.xlane.xlu1 %1185 }
 0x466   :  { %1218 = vst [vmem:[#allocation10 + $0x18] sm:$0xff] %v1210_v46  ;;  %v1194_v50 = vmul.f32 0.6931472, %v1620_v47  ;;  %1623 = vlog2.f32 %v1186_v33 }
 0x467   :  { %1215 = vst [vmem:[#allocation10] sm:$0xff] %v1207_v48  ;;  %v1188_v51 = vpop.xlane.xlu0 %1187 }
 0x468   :  { %v1208_v36 = vsub.f32 %v1878_v11, %v1194_v50  ;;  %1625 = vlog2.f32 %v1188_v51 }
 0x469   :  { %v1190_v53 = vpop.xlane.xlu1 %1189 }
 0x46a   :  { %1216 = vst [vmem:[#allocation10 + $0x8] sm:$0xff] %v1208_v36  ;;  %1627 = vlog2.f32 %v1190_v53 }
 0x46e   :  { %v1622_v54 = vpop.eup %1621 }
 0x46f   :  { %v1200_v55 = vmul.f32 0.6931472, %v1622_v54 }
 0x470   :  { %v1624_v56 = vpop.eup %1623 }
 0x471   :  { %v1211_v57 = vsub.f32 %v1881_v16, %v1200_v55  ;;  %v1202_v58 = vmul.f32 0.6931472, %v1624_v56 }
 0x472   :  { %v1626_v59 = vpop.eup %1625 }
 0x473   :  { %1219 = vst [vmem:[#allocation10 + $0x20] sm:$0xff] %v1211_v57  ;;  %v1212_v60 = vsub.f32 %v1884_v17, %v1202_v58  ;;  %v1204_v61 = vmul.f32 0.6931472, %v1626_v59 }
 0x474   :  { %v1628_v62 = vpop.eup %1627 }
 0x475   :  { %1220 = vst [vmem:[#allocation10 + $0x28] sm:$0xff] %v1212_v60  ;;  %v1213_v63 = vsub.f32 %v1887_v21, %v1204_v61  ;;  %v1206_v49 = vmul.f32 0.6931472, %v1628_v62 }
 0x477   :  { %1221 = vst [vmem:[#allocation10 + $0x30] sm:$0xff] %v1213_v63  ;;  %v1214_v0 = vsub.f32 %v1890_v27, %v1206_v49 }
 0x479   :  { %1222 = vst [vmem:[#allocation10 + $0x38] sm:$0xff] %v1214_v0 }
 0x47a   :  { %1728 = shalt.err (!%p1725_p8)
}
 0x47b   :  { %s1729_s10 = scalar_lea.hbm %s1918_s7, 1024 }
 0x47c   :  { %p1730_p9 = scmp.ne.s32.totalorder %s1918_s7, %s1729_s10  ;;  %p1733_p10 = scmp.lt.u32.totalorder %s1729_s10, %s1918_s7 }
 0x47e   :  { %p1735_p11 = pnand %p1733_p10, %p1730_p9 }
 0x480   :  { %1738 = shalt.err (!%p1735_p11)
}
 0x481   :  { %s1756_s18 = smov 128   ;;  %s1757_s0 = smov 8  }
 0x482   :  { %1234 = dma.vmem_to_hbm [thread:$0]  %s1229_s29, 1024, %s1918_s7, [#allocation4], %s1756_s18, %s1756_s18, %s1757_s0  }
 0x483   :  { %1745 = dma.done.wait [#allocation4], 1024  }
 0x484   :  { %1746 = vsyncadd [#allocation4], 4294966272 }
 0x485   :  { %1238 = vsyncpa [#allocation3], 1 }
 0x486   :  { %1239 = vsyncpa [#allocation6], 1 }
 0x487   :  { %1240 = vsyncpa [#allocation9], 1 }
 0x488   :  { %1241 = vsyncpa [#allocation4], 1 }

</bundles_post_ra>
